<compile_context>
chip_gen: v6e
topology: v6e:2x2x1
jax: 0.10.0
libtpu: 0.0.40
codegen_flags: <defaults>
</compile_context>

<pallas_src>
import jax
import jax.numpy as jnp
from jax.experimental import pallas as pl
from jax.experimental.pallas import tpu as pltpu


def gate_kernel(ctx_ref, x_ref, wa_ref, ba_ref, wo_ref, bo_ref, o_ref):
    # Two skinny MXU passes with f32 accumulation.
    logits = (
        jnp.dot(ctx_ref[...], wa_ref[...], preferred_element_type=jnp.float32)
        + ba_ref[...]
    )                                                    # [TB, n_ops]  analyst(context)
    ops_out = (
        jnp.dot(x_ref[...], wo_ref[...], preferred_element_type=jnp.float32)
        + bo_ref[...]
    )                                                    # [TB, n_ops]  per-op linear heads

    # Stable softmax with the denominator folded into the final [TB, 1] scale:
    #   out = sum(e * ops_out, -1) / sum(e, -1)
    m = jnp.max(logits, axis=-1, keepdims=True)
    e = jnp.exp(logits - m)
    num = jnp.sum(e * ops_out, axis=-1, keepdims=True)   # [TB, 1]
    den = jnp.sum(e, axis=-1, keepdims=True)             # [TB, 1]
    o_ref[...] = num * pl.reciprocal(den, approx=False)


def _pick_block_b(B, d_total, itemsize, sublane_mult):
    """Batch tile: dtype-aware sublane multiple, sized so one pipeline buffer of
    the two activation streams is ~8 MiB (double-buffered ~16 MiB), well inside
    the 32 MiB vmem limit we request and large enough to amortize per-step
    grid overhead."""
    per_buffer_budget = 8 * 1024 * 1024
    tb = per_buffer_budget // max(1, d_total * itemsize)
    tb = max(sublane_mult, (tb // sublane_mult) * sublane_mult)

    b_round = pl.cdiv(B, sublane_mult) * sublane_mult
    tb = min(tb, b_round)

    # Prefer >= 2 grid steps when the batch allows it, so ("parallel",) can
    # shard across both TensorCores on v7x (megacore scheduling on v6e).
    if tb >= b_round and b_round >= 2 * sublane_mult:
        half = pl.cdiv(b_round // 2, sublane_mult) * sublane_mult
        tb = max(sublane_mult, half)
    return int(tb)


def gate_forward(inputs, context, w_ops, b_ops, w_a, b_a, *, block_b=None):
    """Fused Gate forward.

    inputs : [B, D_in]
    context: [B, D_ctx]
    w_ops  : [n_ops, D_in] (PyTorch Linear weight layout, one row per operator)
    b_ops  : [n_ops]
    w_a    : [n_ops, D_ctx]
    b_a    : [n_ops]
    returns: [B, 1] float32
    """
    B, D_in = inputs.shape
    Bc, D_ctx = context.shape
    assert B == Bc
    n_ops = w_ops.shape[0]
    d_total = D_ctx + D_in

    # Keep the narrow activation dtype (bf16 stays bf16); accumulate in f32 in-kernel.
    compute_dtype = jnp.promote_types(inputs.dtype, context.dtype)
    itemsize = jnp.dtype(compute_dtype).itemsize
    sublane_mult = {4: 8, 2: 16, 1: 32}.get(itemsize, 8)

    inputs = inputs.astype(compute_dtype)
    context = context.astype(compute_dtype)

    # Weights transposed to [D, n_ops]; biases kept in f32 (added post-accumulate).
    wa_t = jnp.asarray(w_a).T.astype(compute_dtype)        # [D_ctx, n_ops]
    wo_t = jnp.asarray(w_ops).T.astype(compute_dtype)      # [D_in,  n_ops]
    ba = jnp.asarray(b_a, jnp.float32).reshape(1, n_ops)
    bo = jnp.asarray(b_ops, jnp.float32).reshape(1, n_ops)

    tb = block_b if block_b is not None else _pick_block_b(
        B, d_total, itemsize, sublane_mult)
    num_tiles = pl.cdiv(B, tb)                              # ragged tail handled by Pallas

    # VMEM: double-buffered activation streams + resident weights/biases/output.
    act_bytes = 2 * tb * d_total * itemsize
    resident_bytes = d_total * n_ops * itemsize + 2 * n_ops * 4 + 2 * tb * 4
    vmem_limit = min(32 << 20, max(16 << 20, 2 * (act_bytes + resident_bytes)))

    cost = pl.CostEstimate(
        flops=2 * B * d_total * n_ops,
        transcendentals=B * n_ops,
        bytes_accessed=B * d_total * itemsize + B * 4 + d_total * n_ops * itemsize,
    )

    out = pl.pallas_call(
        gate_kernel,
        out_shape=jax.ShapeDtypeStruct((B, 1), jnp.float32),
        grid=(num_tiles,),
        in_specs=[
            pl.BlockSpec((tb, D_ctx), lambda i: (i, 0)),     # context, streamed per tile
            pl.BlockSpec((tb, D_in), lambda i: (i, 0)),      # inputs, streamed per tile
            pl.BlockSpec((D_ctx, n_ops), lambda i: (0, 0)),  # resident analyst weight
            pl.BlockSpec((1, n_ops), lambda i: (0, 0)),      # resident analyst bias
            pl.BlockSpec((D_in, n_ops), lambda i: (0, 0)),   # resident operator weights
            pl.BlockSpec((1, n_ops), lambda i: (0, 0)),      # resident operator biases
        ],
        out_specs=pl.BlockSpec((tb, 1), lambda i: (i, 0)),
        compiler_params=pltpu.CompilerParams(
            dimension_semantics=("parallel",),   # shard batch tiles across TCs (v7x)
            vmem_limit_bytes=int(vmem_limit),
        ),
        cost_estimate=cost,
    )(context, inputs, wa_t, ba, wo_t, bo)

    return out


def gate_reference(inputs, context, w_ops, b_ops, w_a, b_a):
    """Plain-JAX reference mirroring the PyTorch code path."""
    pred = jax.nn.softmax(context @ w_a.T + b_a, axis=-1)          # [B, n_ops]
    stacked = jnp.stack(
        [inputs @ w_ops[k].reshape(-1, 1) + b_ops[k] for k in range(w_ops.shape[0])],
        axis=1,
    )                                                               # [B, n_ops, 1]
    pred_per_op = pred.reshape(-1, w_ops.shape[0], 1)
    return jnp.sum(pred_per_op * stacked, axis=1)                   # [B, 1]


if __name__ == "__main__":
    key = jax.random.PRNGKey(0)
    B, D_in, D_ctx, n_ops = 8, 32, 32, 4

    k1, k2, k3, k4, k5, k6 = jax.random.split(key, 6)
    inputs = jax.random.normal(k1, (B, D_in), jnp.float32)
    context = jax.random.normal(k2, (B, D_ctx), jnp.float32)
    # Deterministic synthetic parameters (operator heads output_dims=[1]).
    w_ops = 0.1 * jax.random.normal(k3, (n_ops, D_in), jnp.float32)
    b_ops = 0.1 * jax.random.normal(k4, (n_ops,), jnp.float32)
    w_a = 0.1 * jax.random.normal(k5, (n_ops, D_ctx), jnp.float32)
    b_a = 0.1 * jax.random.normal(k6, (n_ops,), jnp.float32)

    out = gate_forward(inputs, context, w_ops, b_ops, w_a, b_a)
    out = jax.block_until_ready(out)

    ref = gate_reference(inputs, context, w_ops, b_ops, w_a, b_a)
    assert out.shape == (B, 1), out.shape
    assert jnp.allclose(out, ref, atol=1e-5, rtol=1e-5), (out, ref)

    print("KERNEL_OK")
</pallas_src>

<mosaic_0001>
module attributes {stable_mosaic.version = 11 : i64} {
  func.func @gate_kernel(%arg0: i32, %arg1: memref<8x32xf32, #tpu.memory_space<vmem>>, %arg2: memref<8x32xf32, #tpu.memory_space<vmem>>, %arg3: memref<32x4xf32, #tpu.memory_space<vmem>>, %arg4: memref<1x4xf32, #tpu.memory_space<vmem>>, %arg5: memref<32x4xf32, #tpu.memory_space<vmem>>, %arg6: memref<1x4xf32, #tpu.memory_space<vmem>>, %arg7: memref<8x1xf32, #tpu.memory_space<vmem>>) attributes {dimension_semantics = [#tpu.dimension_semantics<parallel>], iteration_bounds = array<i64: 1>, scalar_prefetch = 0 : i64, scratch_operands = 0 : i64, tpu.core_type = #tpu.core_type<tc>, window_params = [{transform_indices = @transform_0, window_bounds = array<i64: 8, 32>}, {transform_indices = @transform_1, window_bounds = array<i64: 8, 32>}, {pipeline_mode = #tpu.pipeline_mode<synchronous>, transform_indices = @transform_2, window_bounds = array<i64: 32, 4>}, {pipeline_mode = #tpu.pipeline_mode<synchronous>, transform_indices = @transform_3, window_bounds = array<i64: 1, 4>}, {pipeline_mode = #tpu.pipeline_mode<synchronous>, transform_indices = @transform_4, window_bounds = array<i64: 32, 4>}, {pipeline_mode = #tpu.pipeline_mode<synchronous>, transform_indices = @transform_5, window_bounds = array<i64: 1, 4>}, {transform_indices = @transform_6, window_bounds = array<i64: 8, 1>}]} {
    %c0 = arith.constant 0 : index
    %c0_0 = arith.constant 0 : index
    %0 = vector.load %arg1[%c0, %c0_0] : memref<8x32xf32, #tpu.memory_space<vmem>>, vector<8x32xf32>
    %c0_1 = arith.constant 0 : index
    %c0_2 = arith.constant 0 : index
    %1 = vector.load %arg3[%c0_1, %c0_2] : memref<32x4xf32, #tpu.memory_space<vmem>>, vector<32x4xf32>
    %cst = arith.constant dense<0.000000e+00> : vector<8x4xf32>
    %2 = tpu.matmul %0, %1, %cst {dimension_numbers = #tpu.dot_dimension_numbers<[1], [0], [0], [1], [0, 0, 1, 1], [], []>} : vector<8x32xf32>, vector<32x4xf32>, vector<8x4xf32> -> vector<8x4xf32>
    %c0_3 = arith.constant 0 : index
    %c0_4 = arith.constant 0 : index
    %3 = vector.load %arg4[%c0_3, %c0_4] : memref<1x4xf32, #tpu.memory_space<vmem>>, vector<1x4xf32>
    %4 = vector.broadcast %3 : vector<1x4xf32> to vector<8x4xf32>
    %5 = arith.addf %2, %4 : vector<8x4xf32>
    %c0_5 = arith.constant 0 : index
    %c0_6 = arith.constant 0 : index
    %6 = vector.load %arg2[%c0_5, %c0_6] : memref<8x32xf32, #tpu.memory_space<vmem>>, vector<8x32xf32>
    %c0_7 = arith.constant 0 : index
    %c0_8 = arith.constant 0 : index
    %7 = vector.load %arg5[%c0_7, %c0_8] : memref<32x4xf32, #tpu.memory_space<vmem>>, vector<32x4xf32>
    %cst_9 = arith.constant dense<0.000000e+00> : vector<8x4xf32>
    %8 = tpu.matmul %6, %7, %cst_9 {dimension_numbers = #tpu.dot_dimension_numbers<[1], [0], [0], [1], [0, 0, 1, 1], [], []>} : vector<8x32xf32>, vector<32x4xf32>, vector<8x4xf32> -> vector<8x4xf32>
    %c0_10 = arith.constant 0 : index
    %c0_11 = arith.constant 0 : index
    %9 = vector.load %arg6[%c0_10, %c0_11] : memref<1x4xf32, #tpu.memory_space<vmem>>, vector<1x4xf32>
    %10 = vector.broadcast %9 : vector<1x4xf32> to vector<8x4xf32>
    %11 = arith.addf %8, %10 : vector<8x4xf32>
    %cst_12 = arith.constant dense<0xFF800000> : vector<8xf32>
    %12 = vector.multi_reduction <maximumf>, %5, %cst_12 [1] : vector<8x4xf32> to vector<8xf32>
    %13 = vector.shape_cast %12 : vector<8xf32> to vector<8x1xf32>
    %14 = vector.broadcast %13 : vector<8x1xf32> to vector<8x4xf32>
    %15 = arith.subf %5, %14 : vector<8x4xf32>
    %16 = math.exp %15 : vector<8x4xf32>
    %17 = arith.mulf %16, %11 : vector<8x4xf32>
    %cst_13 = arith.constant dense<0.000000e+00> : vector<8xf32>
    %18 = vector.multi_reduction <add>, %17, %cst_13 [1] : vector<8x4xf32> to vector<8xf32>
    %19 = vector.shape_cast %18 : vector<8xf32> to vector<8x1xf32>
    %cst_14 = arith.constant dense<0.000000e+00> : vector<8xf32>
    %20 = vector.multi_reduction <add>, %16, %cst_14 [1] : vector<8x4xf32> to vector<8xf32>
    %21 = vector.shape_cast %20 : vector<8xf32> to vector<8x1xf32>
    %22 = tpu.reciprocal %21 : vector<8x1xf32> -> vector<8x1xf32>
    %23 = arith.mulf %19, %22 : vector<8x1xf32>
    %c0_15 = arith.constant 0 : index
    %c0_16 = arith.constant 0 : index
    %24 = vector.load %arg7[%c0_15, %c0_16] : memref<8x1xf32, #tpu.memory_space<vmem>>, vector<8x1xf32>
    tpu.vector_store %arg7[%c0_15, %c0_16], %23 {strides = array<i32>} : memref<8x1xf32, #tpu.memory_space<vmem>>, vector<8x1xf32>,
    return
  }
  func.func @transform_0(%arg0: i32) -> (i32, i32) {
    %c0_i32 = arith.constant 0 : i32
    %c0_i32_0 = arith.constant 0 : i32
    return %arg0, %c0_i32 : i32, i32
  }
  func.func @transform_1(%arg0: i32) -> (i32, i32) {
    %c0_i32 = arith.constant 0 : i32
    %c0_i32_0 = arith.constant 0 : i32
    return %arg0, %c0_i32 : i32, i32
  }
  func.func @transform_2(%arg0: i32) -> (i32, i32) {
    %c0_i32 = arith.constant 0 : i32
    %c0_i32_0 = arith.constant 0 : i32
    %c0_i32_1 = arith.constant 0 : i32
    return %c0_i32, %c0_i32_0 : i32, i32
  }
  func.func @transform_3(%arg0: i32) -> (i32, i32) {
    %c0_i32 = arith.constant 0 : i32
    %c0_i32_0 = arith.constant 0 : i32
    %c0_i32_1 = arith.constant 0 : i32
    return %c0_i32, %c0_i32_0 : i32, i32
  }
  func.func @transform_4(%arg0: i32) -> (i32, i32) {
    %c0_i32 = arith.constant 0 : i32
    %c0_i32_0 = arith.constant 0 : i32
    %c0_i32_1 = arith.constant 0 : i32
    return %c0_i32, %c0_i32_0 : i32, i32
  }
  func.func @transform_5(%arg0: i32) -> (i32, i32) {
    %c0_i32 = arith.constant 0 : i32
    %c0_i32_0 = arith.constant 0 : i32
    %c0_i32_1 = arith.constant 0 : i32
    return %c0_i32, %c0_i32_0 : i32, i32
  }
  func.func @transform_6(%arg0: i32) -> (i32, i32) {
    %c0_i32 = arith.constant 0 : i32
    %c0_i32_0 = arith.constant 0 : i32
    return %arg0, %c0_i32 : i32, i32
  }
}

</mosaic_0001>

<bundles_post_ra>
// kernel: tpu_custom_call.1
= control target key start
LH: loop header
LB: loop body
LE: loop exit
PB: predicated region body
PF: predicated region fallthrough
CT: control target
= control target key end

     0   :  { %v258_v0 = vmov 0.0   ;;  %vm259_vm0 = vmmov 0   ;;  %vm35_vm1 = vcmask 261120   ;;  %vm194_vm2 = vcmask 31744   ;;  %s339_s2 = inlined_call_operand.vmem [shape: f32[32,4], index: 2, kind: input, shape index: {}]   ;;  %s340_s4 = inlined_call_operand.vmem [shape: f32[32,4], index: 4, kind: input, shape index: {}]   ;;  %s341_s0 = inlined_call_operand.vmem [shape: f32[8,32], index: 0, kind: input, shape index: {}]   ;;  %s342_s1 = inlined_call_operand.vmem [shape: f32[8,32], index: 1, kind: input, shape index: {}]   ;;  %s343_s3 = inlined_call_operand.vmem [shape: f32[1,4], index: 3, kind: input, shape index: {}]   ;;  %s344_s5 = inlined_call_operand.vmem [shape: f32[1,4], index: 5, kind: input, shape index: {}]   ;;  %s345_s6 = inlined_call_operand.vmem [shape: f32[8,1], index: 6, kind: output, shape index: {}]  }
   0x1   :  { %230 = vmatprep.subr.mxu0 %v258_v0  ;;  %v27_v1 = vld [vmem:[%s339_s2 + $0x18] sm:$0xff]  ;;  %v26_v2 = vld [vmem:[%s339_s2 + $0x10] sm:$0xff]  ;;  %238 = vmatprep.mubr.msk.f32.mxu0 %vm259_vm0, %v258_v0  ;;  %v25_v4 = vld [vmem:[%s339_s2 + $0x8] sm:$0xff]  ;;  %vm210_vm3 = vcmask 7168  }
   0x2   :  { %231 = vmatpush3.msra.mxu0 %v27_v1  ;;  %241 = vmatprep.subr.mxu1 %v258_v0  ;;  %v113_v3 = vld [vmem:[%s340_s4 + $0x18] sm:$0xff]  ;;  %v112_v5 = vld [vmem:[%s340_s4 + $0x10] sm:$0xff]  ;;  %v111_v6 = vld [vmem:[%s340_s4 + $0x8] sm:$0xff] }
   0x3   :  { %232 = vmatprep.subr.mxu0 %v258_v0  ;;  %242 = vmatpush3.msra.mxu1 %v113_v3  ;;  %v24_v7 = vld [vmem:[%s339_s2] sm:$0xff] }
   0x4   :  { %233 = vmatpush3.msra.mxu0 %v26_v2  ;;  %243 = vmatprep.subr.mxu1 %v258_v0  ;;  %v23_v8 = vld [vmem:[%s341_s0] sm:$0xff] }
   0x5   :  { %234 = vmatprep.subr.mxu0 %v258_v0  ;;  %244 = vmatpush3.msra.mxu1 %v112_v5  ;;  %v110_v9 = vld [vmem:[%s340_s4] sm:$0xff] }
   0x6   :  { %235 = vmatpush3.msra.mxu0 %v25_v4  ;;  %245 = vmatprep.subr.mxu1 %v258_v0  ;;  %v109_v10 = vld [vmem:[%s342_s1] sm:$0xff] }
   0x7   :  { %236 = vmatprep.subr.mxu0 %v258_v0  ;;  %246 = vmatpush3.msra.mxu1 %v111_v6  ;;  %v216_v11 = vld [vmem:[%s343_s3] ss:$0 sm:$0xff] }
   0x8   :  { %237 = vmatpush3.msra.mxu0 %v24_v7  ;;  %247 = vmatprep.subr.mxu1 %v258_v0  ;;  %v218_v21 = vld [vmem:[%s344_s5] ss:$0 sm:$0xff] }
   0x9   :  { %239 = vmatmul.mubr.msk.f32.vlgmr.msra.gmra.mxu0 %vm35_vm1, %v23_v8  ;;  %248 = vmatpush3.msra.mxu1 %v110_v9 }
   0xa   :  { %249 = vmatprep.mubr.msk.f32.mxu1 %vm259_vm0, %v258_v0 }
   0xb   :  { %250 = vmatmul.mubr.msk.f32.vlgmr.msra.gmra.mxu1 %vm35_vm1, %v109_v10 }
  0xc9   :  { %v105_v12 = vpop.f32.mrf.mxu0 }
  0xca   :  { %v106_v13 = vadd.f32 %v216_v11, %v105_v12 }
  0xcb   :  { %v240_v14 = vpop.f32.mrf.mxu0  ;;  %v190_v16 = vpop.f32.mrf.mxu1 }
  0xcc   :  { %v195_v15 = vsel %vm194_vm2, %v106_v13, -inf  ;;  %v191_v22 = vadd.f32 %v218_v21, %v190_v16 }
  0xcd   :  { %196 = vmax.xlane.f32.xlu0 %v195_v15  ;;  %v251_v17 = vpop.f32.mrf.mxu1 }
 0x156   :  { %v197_v18 = vpop.xlane.xlu0 %196 }
 0x157   :  { %v198_v19 = vsub.f32 %v106_v13, %v197_v18 }
 0x159   :  { %v199_v20 = vmul.f32 1.442695, %v198_v19 }
 0x15b   :  { %254 = vpow2.f32 %v199_v20 }
 0x168   :  { %v255_v23 = vpop.eup %254 }
 0x169   :  { %v205_v24 = vsel %vm194_vm2, %v255_v23, 0.0  ;;  %v201_v25 = vmul.f32 %v255_v23, %v191_v22 }
 0x16a   :  { %206 = vadd.xlane.f32.xlu0 %v205_v24 }
 0x16b   :  { %v202_v26 = vsel %vm194_vm2, %v201_v25, 0.0 }
 0x16c   :  { %203 = vadd.xlane.f32.xlu1 %v202_v26 }
 0x1f3   :  { %v207_v27 = vpop.xlane.xlu0 %206 }
 0x1f4   :  { %256 = vrcp.f32 %v207_v27 }
 0x1f5   :  { %v204_v29 = vpop.xlane.xlu1 %203 }
 0x201   :  { %v257_v28 = vpop.eup %256 }
 0x202   :  { %v209_v30 = vmul.f32 %v257_v28, %v204_v29 }
 0x204   :  { %211 = vst.msk [vmem:[%s345_s6] sm:$0xff] %vm210_vm3, %v209_v30 }

</bundles_post_ra>
